<compile_context>
chip_gen: v7x
topology: tpu7x:2x2x1
jax: 0.10.0
libtpu: 0.0.40
codegen_flags: <defaults>
</compile_context>

<pallas_src>
import jax
import jax.numpy as jnp
from jax.experimental import pallas as pl
from jax.experimental.pallas import tpu as pltpu

_LANE = 128
_SUBLANE = 8


def _cdiv(a, b):
    return -(-a // b)


def _l2_loss_kernel(o_ref, t_ref, out_ref, acc_ref):
    """Processes one (C, BR, 128) pixel tile of one batch element.

    Grid = (N, num_pixel_tiles); axis 1 is the reduction ("arbitrary") axis.
      acc_ref : (BR, 128) f32 running per-pixel-slot sum of L2 norms.
      out_ref : (8, 128)  f32 per-batch partial sums, written on the last tile.
    """
    i = pl.program_id(1)

    @pl.when(i == 0)
    def _():
        acc_ref[...] = jnp.zeros_like(acc_ref)

    d = o_ref[...].astype(jnp.float32) - t_ref[...].astype(jnp.float32)  # (C, BR, 128)
    sq_sum = jnp.sum(d * d, axis=0)       # (BR, 128): leading-axis reduce -> pure VPU
    acc_ref[...] += jnp.sqrt(sq_sum)      # per-pixel L2 norm, accumulated elementwise

    @pl.when(i == pl.num_programs(1) - 1)
    def _():
        br = acc_ref.shape[0]
        folded = jnp.sum(
            acc_ref[...].reshape(br // _SUBLANE, _SUBLANE, _LANE), axis=0
        )                                  # (8, 128) partial sums for this batch element
        out_ref[...] = folded


def l2_loss(output, target, *, target_block_bytes=2 * 1024 * 1024):
    """output, target: NCHW float arrays. Returns [L2, EPE] (two f32 scalars)."""
    assert output.shape == target.shape
    n, c, h, w = output.shape
    hw = h * w
    itemsize = jnp.dtype(output.dtype).itemsize

    # ---- pick the pixel tile: BR rows of 128 lanes, ~target_block_bytes/input ----
    rows_needed = _cdiv(hw, _LANE)
    br = max(_SUBLANE,
             (target_block_bytes // (c * _LANE * itemsize)) // _SUBLANE * _SUBLANE)
    rows_cap = _cdiv(rows_needed, _SUBLANE) * _SUBLANE
    br = min(br, rows_cap)
    num_tiles = _cdiv(rows_needed, br)
    # Rebalance so the last tile isn't mostly padding (often removes padding entirely).
    br = _cdiv(_cdiv(rows_needed, num_tiles), _SUBLANE) * _SUBLANE
    rows_pad = num_tiles * br
    hw_pad = rows_pad * _LANE

    # ---- free reshape; zero-pad only if pixel count isn't tile-aligned ----
    # Zero padding is exact: diff there is 0 => norm 0 => contributes 0 to the
    # sum, and the mean divides by the true pixel count.
    o3 = output.reshape(n, c, hw)
    t3 = target.reshape(n, c, hw)
    if hw_pad != hw:
        pad = ((0, 0), (0, 0), (0, hw_pad - hw))
        o3 = jnp.pad(o3, pad)
        t3 = jnp.pad(t3, pad)
    o4 = o3.reshape(n, c, rows_pad, _LANE)
    t4 = t3.reshape(n, c, rows_pad, _LANE)

    in_spec = pl.BlockSpec((None, c, br, _LANE), lambda b, i: (b, 0, i, 0))

    partials = pl.pallas_call(
        _l2_loss_kernel,
        out_shape=jax.ShapeDtypeStruct((n, _SUBLANE, _LANE), jnp.float32),
        grid_spec=pltpu.PrefetchScalarGridSpec(
            num_scalar_prefetch=0,
            grid=(n, num_tiles),
            in_specs=[in_spec, in_spec],
            out_specs=pl.BlockSpec((None, _SUBLANE, _LANE), lambda b, i: (b, 0, 0)),
            scratch_shapes=[pltpu.VMEM((br, _LANE), jnp.float32)],
        ),
        compiler_params=pltpu.CompilerParams(
            dimension_semantics=("parallel", "arbitrary"),
        ),
    )(o4, t4)

    mean = jnp.sum(partials) / jnp.float32(n * hw)
    # L2 and EPE are the identical reduction; return the same scalar twice.
    return [mean, mean]


if __name__ == "__main__":
    key = jax.random.PRNGKey(0)
    k1, k2 = jax.random.split(key)
    N, C, H, W = 2, 4, 16, 16
    output = jax.random.normal(k1, (N, C, H, W), dtype=jnp.float32)
    target = jax.random.normal(k2, (N, C, H, W), dtype=jnp.float32)

    l2_val, epe_val = l2_loss(output, target)
    jax.block_until_ready(l2_val)
    jax.block_until_ready(epe_val)

    # Pure-JAX reference (same math as torch.norm(..., p=2, dim=1).mean()).
    ref = jnp.mean(jnp.sqrt(jnp.sum((output - target) ** 2, axis=1)))
    assert jnp.allclose(l2_val, ref, rtol=1e-5, atol=1e-5), (l2_val, ref)
    assert jnp.allclose(epe_val, ref, rtol=1e-5, atol=1e-5), (epe_val, ref)

    print("KERNEL_OK")
</pallas_src>

<mosaic_0001>
module attributes {stable_mosaic.version = 11 : i64} {
  func.func @_l2_loss_kernel(%arg0: i32, %arg1: i32, %arg2: memref<1x4x8x128xf32, #tpu.memory_space<vmem>>, %arg3: memref<1x4x8x128xf32, #tpu.memory_space<vmem>>, %arg4: memref<1x8x128xf32, #tpu.memory_space<vmem>>, %arg5: memref<8x128xf32, #tpu.memory_space<vmem>>) attributes {dimension_semantics = [#tpu.dimension_semantics<parallel>, #tpu.dimension_semantics<arbitrary>], iteration_bounds = array<i64: 2, 1>, scalar_prefetch = 0 : i64, scratch_operands = 1 : i64, tpu.core_type = #tpu.core_type<tc>, window_params = [{transform_indices = @transform_0, window_bounds = array<i64: 1, 4, 8, 128>}, {transform_indices = @transform_1, window_bounds = array<i64: 1, 4, 8, 128>}, {transform_indices = @transform_2, window_bounds = array<i64: 1, 8, 128>}]} {
    %c0_i32 = arith.constant 0 : i32
    %0 = arith.cmpi eq, %arg1, %c0_i32 : i32
    %1 = arith.extui %0 : i1 to i32
    %c0_i32_0 = arith.constant 0 : i32
    %2 = arith.cmpi ne, %1, %c0_i32_0 : i32
    scf.if %2 {
      %cst_14 = arith.constant 0.000000e+00 : f32
      %17 = vector.broadcast %cst_14 : f32 to vector<8x128xf32>
      %c0_15 = arith.constant 0 : index
      %c0_16 = arith.constant 0 : index
      %18 = vector.load %arg5[%c0_15, %c0_16] : memref<8x128xf32, #tpu.memory_space<vmem>>, vector<8x128xf32>
      tpu.vector_store %arg5[%c0_15, %c0_16], %17 {strides = array<i32>} : memref<8x128xf32, #tpu.memory_space<vmem>>, vector<8x128xf32>,
    } else {
    }
    %c0 = arith.constant 0 : index
    %c0_1 = arith.constant 0 : index
    %c0_2 = arith.constant 0 : index
    %c0_3 = arith.constant 0 : index
    %3 = vector.load %arg2[%c0, %c0_1, %c0_2, %c0_3] : memref<1x4x8x128xf32, #tpu.memory_space<vmem>>, vector<1x4x8x128xf32>
    %4 = vector.shape_cast %3 : vector<1x4x8x128xf32> to vector<4x8x128xf32>
    %c0_4 = arith.constant 0 : index
    %c0_5 = arith.constant 0 : index
    %c0_6 = arith.constant 0 : index
    %c0_7 = arith.constant 0 : index
    %5 = vector.load %arg3[%c0_4, %c0_5, %c0_6, %c0_7] : memref<1x4x8x128xf32, #tpu.memory_space<vmem>>, vector<1x4x8x128xf32>
    %6 = vector.shape_cast %5 : vector<1x4x8x128xf32> to vector<4x8x128xf32>
    %7 = arith.subf %4, %6 : vector<4x8x128xf32>
    %8 = arith.mulf %7, %7 : vector<4x8x128xf32>
    %cst = arith.constant dense<0.000000e+00> : vector<8x128xf32>
    %9 = vector.multi_reduction <add>, %8, %cst [0] : vector<4x8x128xf32> to vector<8x128xf32>
    %c0_8 = arith.constant 0 : index
    %c0_9 = arith.constant 0 : index
    %10 = vector.load %arg5[%c0_8, %c0_9] : memref<8x128xf32, #tpu.memory_space<vmem>>, vector<8x128xf32>
    %11 = math.sqrt %9 : vector<8x128xf32>
    %12 = arith.addf %10, %11 : vector<8x128xf32>
    %c0_10 = arith.constant 0 : index
    %c0_11 = arith.constant 0 : index
    %13 = vector.load %arg5[%c0_10, %c0_11] : memref<8x128xf32, #tpu.memory_space<vmem>>, vector<8x128xf32>
    tpu.vector_store %arg5[%c0_10, %c0_11], %12 {strides = array<i32>} : memref<8x128xf32, #tpu.memory_space<vmem>>, vector<8x128xf32>,
    %c0_i32_12 = arith.constant 0 : i32
    %14 = arith.cmpi eq, %arg1, %c0_i32_12 : i32
    %15 = arith.extui %14 : i1 to i32
    %c0_i32_13 = arith.constant 0 : i32
    %16 = arith.cmpi ne, %15, %c0_i32_13 : i32
    scf.if %16 {
      %c0_14 = arith.constant 0 : index
      %c0_15 = arith.constant 0 : index
      %17 = vector.load %arg5[%c0_14, %c0_15] : memref<8x128xf32, #tpu.memory_space<vmem>>, vector<8x128xf32>
      %18 = vector.shape_cast %17 : vector<8x128xf32> to vector<1x8x128xf32>
      %cst_16 = arith.constant dense<0.000000e+00> : vector<8x128xf32>
      %19 = vector.multi_reduction <add>, %18, %cst_16 [0] : vector<1x8x128xf32> to vector<8x128xf32>
      %c0_17 = arith.constant 0 : index
      %c0_18 = arith.constant 0 : index
      %c0_19 = arith.constant 0 : index
      %20 = vector.load %arg4[%c0_17, %c0_18, %c0_19] : memref<1x8x128xf32, #tpu.memory_space<vmem>>, vector<1x8x128xf32>
      %21 = vector.shape_cast %20 : vector<1x8x128xf32> to vector<8x128xf32>
      %22 = vector.shape_cast %19 : vector<8x128xf32> to vector<1x8x128xf32>
      tpu.vector_store %arg4[%c0_17, %c0_18, %c0_19], %22 {strides = array<i32>} : memref<1x8x128xf32, #tpu.memory_space<vmem>>, vector<1x8x128xf32>,
    } else {
    }
    return
  }
  func.func @transform_0(%arg0: i32, %arg1: i32) -> (i32, i32, i32, i32) {
    %c0_i32 = arith.constant 0 : i32
    %c0_i32_0 = arith.constant 0 : i32
    %c0_i32_1 = arith.constant 0 : i32
    return %arg0, %c0_i32, %arg1, %c0_i32_0 : i32, i32, i32, i32
  }
  func.func @transform_1(%arg0: i32, %arg1: i32) -> (i32, i32, i32, i32) {
    %c0_i32 = arith.constant 0 : i32
    %c0_i32_0 = arith.constant 0 : i32
    %c0_i32_1 = arith.constant 0 : i32
    return %arg0, %c0_i32, %arg1, %c0_i32_0 : i32, i32, i32, i32
  }
  func.func @transform_2(%arg0: i32, %arg1: i32) -> (i32, i32, i32) {
    %c0_i32 = arith.constant 0 : i32
    %c0_i32_0 = arith.constant 0 : i32
    %c0_i32_1 = arith.constant 0 : i32
    return %arg0, %c0_i32, %c0_i32_0 : i32, i32, i32
  }
}

</mosaic_0001>

<bundles_post_ra>
// kernel: tpu_custom_call.1
= control target key start
LH: loop header
LB: loop body
LE: loop exit
PB: predicated region body
PF: predicated region fallthrough
CT: control target
= control target key end

     0   :  { %7 = vsyncpa [#allocation4], 0  ;;  %s873_s0 = inlined_call_operand.hbm [shape: f32[2,4,8,128], index: 0, kind: input, shape index: {}]   ;;  %s874_s1 = inlined_call_operand.hbm [shape: f32[2,4,8,128], index: 1, kind: input, shape index: {}]   ;;  %s875_s2 = inlined_call_operand.hbm [shape: f32[2,8,128], index: 2, kind: output, shape index: {}]  }
   0x1   :  { %9 = vsyncpa [#allocation4 + $0x1], 0 }
   0x2   :  { %10 = vsyncpa [#allocation7], 0 }
   0x3   :  { %12 = vsyncpa [#allocation7 + $0x1], 0 }
   0x4   :  { %13 = vsyncpa [#allocation5], 0 }
   0x5   :  { %15 = vsyncpa [#allocation5 + $0x1], 0  ;;  %s638_s9 = smov 0   ;;  %s640_s10 = smov 0  }
   0x6   :  { %s642_s11 = smov 0   ;;  %s644_s12 = smov 0  }
   0x7   :  { %s646_s13 = smov 0   ;;  %s648_s14 = smov 0  }
   0x8 LB: > { %s379_s15 = sadd.s32 4294967295, %s616_s14   ;;  %s380_s16 = sadd.s32 4294967294, %s616_s14   ;;  %s616_s14 = sphi %s648_s14, %s21_s14   ;;  %s612_s13 = sphi %s646_s13, %s893_s13   ;;  %s608_s12 = sphi %s644_s12, %s892_s12   ;;  %s604_s11 = sphi %s642_s11, %s891_s11   ;;  %s600_s10 = sphi %s640_s10, %s890_s10   ;;  %s596_s9 = sphi %s638_s9, %s889_s9  }
   0x9   : > { %s33_s17 = sadd.s32 1, %s612_s13  ;;  %s42_s18 = sadd.s32 1, %s604_s11 }
   0xa   : > { %p35_p0 = scmp.ge.s32.totalorder %s33_s17, 2  ;;  %p49_p1 = scmp.ne.s32.totalorder %s604_s11, %s600_s10 }
   0xb   : > { %p50_p2 = scmp.eq.s32.totalorder %s616_s14, 0  ;;  %p55_p3 = scmp.ne.s32.totalorder %s600_s10, %s596_s9 }
   0xc   : > { %s895_s17 = smov (%p35_p0, %s33_s17), 0  ;;  %p56_p5 = scmp.eq.s32.totalorder %s379_s15, 0 }
   0xd   : > { %p679_p4 = por %p50_p2, %p49_p1  ;;  %s37_s20 = ssub.s32 %s612_s13, %s895_s17 }
   0xe   : > { %p107_p6 = scmp.eq.s32.totalorder %s379_s15, 1  ;;  %p40_p7 = scmp.eq.s32.totalorder %s37_s20, 0 }
   0xf   : > { %p685_p8 = por %p56_p5, %p55_p3  ;;  %p113_p10 = scmp.eq.s32.totalorder %s380_s16, 1 }
  0x10   : > { %p689_p9 = por %p107_p6, %p49_p1  ;;  %p416_p13 = scmp.lt.s32.totalorder %s616_s14, 2 }
  0x11   : > { %s879_s21 = scalar_select %p685_p8, 1, 0 }
  0x12   : > { %s880_s22 = scalar_select %p689_p9, 1, 0 }
  0x13   : > { %s694_s23 = scalar_select %p40_p7, %s604_s11, %s42_s18  }
  0x14   : > { %p696_p11 = por %p113_p10, %p55_p3  ;;  %s703_s25 = sand.u32 1, %s604_s11  }
  0x15   : > { %s383_s26 = sshll.u32 %s703_s25, 5  ;;  %s397_s27 = sshll.u32 %s612_s13, 9 }
  0x16   : > { %s881_s24 = scalar_select %p696_p11, 1, 0 }
  0x17   : > { %s712_s30 = scalar_lea.hbm %s873_s0, %s397_s27  ;;  %s137_s3 = scalar_lea.vmem [#allocation3], %s383_s26 }
  0x18   : > { %s145_s4 = sshll.u32 %s137_s3, 4  ;;  %p720_p0 = pnand %p416_p13, %p679_p4  ;;  %s716_s4 = int_to_ptr.vmem [resolvable:$true] %s145_s4 }
  0x19   : > { %s134_s6 = scalar_lea.sflag [#allocation4], %s703_s25  ;;  %s470_s7 = scalar_lea.hbm %s712_s30, 512 }
  0x1a   : > { %p471_p2 = scmp.ne.s32.totalorder %s712_s30, %s470_s7  ;;  %p472_p3 = pneg %p720_p0 }
  0x1b   : > { %s475_s16 = scalar_lea.hbm %s873_s0, 1024  ;;  %p476_p4 = scmp.lt.u32.totalorder %s712_s30, %s873_s0 }
  0x1c   : > { %p473_p5 = pnand %p472_p3, %p471_p2  ;;  %p477_p7 = scmp.lt.u32.totalorder %s475_s16, %s470_s7 }
  0x1d   : > { %p479_p13 = scmp.lt.u32.totalorder %s470_s7, %s712_s30 }
  0x1e   : > { %p474_p6 = pneg %p473_p5  ;;  %p478_p10 = por %p477_p7, %p476_p4 }
  0x20   : > { %p480_p12 = por %p479_p13, %p478_p10 }
  0x22   : > { %p481_p1 = pnand %p480_p12, %p474_p6 }
  0x24   : > { %484 = shalt.err (!%p481_p1)
}
  0x25   : > { %s485_s20 = scalar_lea.vmem %s716_s4, 512  ;;  %s618_s28 = smov [#allocation3]  }
  0x26   : > { %p486_p2 = scmp.ne.s32.totalorder %s716_s4, %s485_s20  ;;  %s490_s29 = sshll.u32 %s618_s28, 4  ;;  %s491_s29 = int_to_ptr.vmem [resolvable:$false] %s490_s29 }
  0x27   : > { %s492_s3 = scalar_lea.vmem %s491_s29, 1024  ;;  %p493_p9 = scmp.lt.s32.totalorder %s716_s4, %s491_s29 }
  0x28   : > { %p488_p5 = pnand %p486_p2, %p472_p3  ;;  %p494_p4 = scmp.lt.s32.totalorder %s492_s3, %s485_s20 }
  0x2a   : > { %p489_p11 = pneg %p488_p5  ;;  %p495_p7 = por %p494_p4, %p493_p9 }
  0x2c   : > { %p496_p10 = pnand %p495_p7, %p489_p11 }
  0x2e   : > { %499 = shalt.err (!%p496_p10)
}
  0x2f   : > { %s619_s7 = smov 128   ;;  %s620_s8 = smov 8  }
  0x30   : > { %408 = dma.hbm_to_vmem [thread:$0]  (!%p720_p0), %s712_s30, 512, %s716_s4, %s134_s6, %s619_s7, %s619_s7, %s620_s8  }
  0x31   : > { %p175_p9 = scmp.lt.s32.totalorder %s616_s14, 3  ;;  %s762_s18 = scalar_lea.hbm %s874_s1, %s397_s27 }
  0x32   : > { %p883_p11 = scmp.ge.s32.totalorder %s616_s14, 1  ;;  %s159_s20 = scalar_lea.vmem [#allocation6], %s383_s26 }
  0x33   : > { %s167_s28 = sshll.u32 %s159_s20, 4  ;;  %s156_s30 = scalar_lea.sflag [#allocation7], %s703_s25  ;;  %s772_s28 = int_to_ptr.vmem [resolvable:$true] %s167_s28 }
  0x34   : > { %p766_p12 = pnand %p883_p11, %p175_p9  ;;  %s500_s4 = scalar_lea.hbm %s762_s18, 512 }
  0x35   : > { %p501_p1 = scmp.ne.s32.totalorder %s762_s18, %s500_s4  ;;  %s505_s29 = scalar_lea.hbm %s874_s1, 1024 }
  0x36   : > { %p506_p2 = scmp.lt.u32.totalorder %s762_s18, %s874_s1  ;;  %p507_p5 = scmp.lt.u32.totalorder %s505_s29, %s500_s4 }
  0x37   : > { %p503_p6 = pnand %p501_p1, %p472_p3  ;;  %p509_p7 = scmp.lt.u32.totalorder %s500_s4, %s762_s18 }
  0x38   : > { %p508_p4 = por %p507_p5, %p506_p2 }
  0x39   : > { %p504_p13 = pneg %p503_p6 }
  0x3a   : > { %p510_p10 = por %p509_p7, %p508_p4 }
  0x3c   : > { %p511_p9 = pnand %p510_p10, %p504_p13 }
  0x3e   : > { %514 = shalt.err (!%p511_p9)
}
  0x3f   : > { %s515_s26 = scalar_lea.vmem %s772_s28, 512  ;;  %s621_s16 = smov [#allocation6]  }
  0x40   : > { %p516_p11 = scmp.ne.s32.totalorder %s772_s28, %s515_s26  ;;  %s520_s20 = sshll.u32 %s621_s16, 4  ;;  %s521_s20 = int_to_ptr.vmem [resolvable:$false] %s520_s20 }
  0x41   : > { %s522_s27 = scalar_lea.vmem %s521_s20, 1024  ;;  %p523_p8 = scmp.lt.s32.totalorder %s772_s28, %s521_s20 }
  0x42   : > { %p518_p1 = pnand %p516_p11, %p472_p3  ;;  %p524_p2 = scmp.lt.s32.totalorder %s522_s27, %s515_s26 }
  0x44   : > { %p519_p6 = pneg %p518_p1  ;;  %p525_p5 = por %p524_p2, %p523_p8 }
  0x46   : > { %p526_p4 = pnand %p525_p5, %p519_p6 }
  0x48   : > { %529 = shalt.err (!%p526_p4)
}
  0x49   : > { %411 = dma.hbm_to_vmem [thread:$0]  (!%p720_p0), %s762_s18, 512, %s772_s28, %s156_s30, %s619_s7, %s619_s7, %s620_s8  }
  0x4a   : > { %179 = sbr.rel (%p766_p12) target bundleno = 126 (0x7e), region = 28  ;;  %s806_s4 = sand.u32 (!%p766_p12), 1, %s600_s10  }
  0x4b   : > { %s390_s6 = sshll.u32 (!%p766_p12), %s806_s4, 5  ;;  %s182_s29 = scalar_lea.sflag (!%p766_p12), [#allocation4], %s806_s4 }
  0x4c   : > { %s185_s5 = scalar_lea.vmem (!%p766_p12), [#allocation3], %s390_s6  ;;  %p885_p8 = scmp.ne.s32.totalorder (!%p766_p12), %s879_s21, 0 }
  0x51   : > { %583 = dma.done.wait (%p885_p8), %s182_s29, 512  }
  0x52   : > { %585 = vsyncadd (%p885_p8), %s182_s29, 4294966784  ;;  %s191_s25 = scalar_lea.sflag [#allocation7], %s806_s4  ;;  %s194_s7 = scalar_lea.vmem [#allocation6], %s390_s6 }
  0x53   : > { %587 = dma.done.wait (%p885_p8), %s191_s25, 512  }
  0x54   : > { %589 = vsyncadd (%p885_p8), %s191_s25, 4294966784  ;;  %v225_v0 = vld [vmem:[%s185_s5] sm:$0xff]  ;;  %v226_v1 = vld [vmem:[%s185_s5 + $0x8] sm:$0xff]  ;;  %s392_s21 = sshll.u32 %s806_s4, 3  ;;  %s394_s19 = sshll.u32 %s608_s12, 7 }
  0x55   : > { %v227_v2 = vld [vmem:[%s185_s5 + $0x10] sm:$0xff]  ;;  %v228_v3 = vld [vmem:[%s185_s5 + $0x18] sm:$0xff]  ;;  %v229_v4 = vld [vmem:[%s194_s7] sm:$0xff]  ;;  %s219_s8 = scalar_lea.vmem [#allocation8], %s392_s21  ;;  %s826_s3 = scalar_lea.hbm %s875_s2, %s394_s19 }
  0x56   : > { %v230_v5 = vld [vmem:[%s194_s7 + $0x8] sm:$0xff]  ;;  %v231_v6 = vld [vmem:[%s194_s7 + $0x10] sm:$0xff]  ;;  %v232_v7 = vld [vmem:[%s194_s7 + $0x18] sm:$0xff]  ;;  %v233_v8 = vsub.f32 %v225_v0, %v229_v4  ;;  %s274_s18 = sshll.u32 %s219_s8, 4  ;;  %s261_s15 = scalar_lea.sflag [#allocation5], %s806_s4  ;;  %s821_s18 = int_to_ptr.vmem [resolvable:$true] %s274_s18 }
  0x57   : > { %v234_v9 = vsub.f32 %v226_v1, %v230_v5  ;;  %v235_v10 = vsub.f32 %v227_v2, %v231_v6  ;;  %v236_v11 = vsub.f32 %v228_v3, %v232_v7  ;;  %s530_s26 = scalar_lea.vmem %s821_s18, 128  ;;  %p886_p3 = scmp.ne.s32.totalorder %s880_s22, 0 }
  0x58   : > { %v237_v12 = vmul.f32 %v233_v8, %v233_v8  ;;  %p531_p0 = scmp.ne.s32.totalorder %s821_s18, %s530_s26  ;;  %s622_s12 = smov [#allocation8]  }
  0x59   : > { %v238_v13 = vmul.f32 %v234_v9, %v234_v9  ;;  %v239_v14 = vmul.f32 %v235_v10, %v235_v10  ;;  %v240_v15 = vmul.f32 %v236_v11, %v236_v11  ;;  %s534_s16 = sshll.u32 %s622_s12, 4  ;;  %s535_s16 = int_to_ptr.vmem [resolvable:$false] %s534_s16 }
  0x5a   : > { %p532_p12 = pnand %p531_p0, %p886_p3  ;;  %s536_s20 = scalar_lea.vmem %s535_s16, 256 }
  0x5b   : > { %v241_v16 = vadd.f32 %v238_v13, %v237_v12  ;;  %p537_p7 = scmp.lt.s32.totalorder %s821_s18, %s535_s16  ;;  %p538_p10 = scmp.lt.s32.totalorder %s536_s20, %s530_s26 }
  0x5c   : > { %p533_p13 = pneg %p532_p12 }
  0x5d   : > { %v242_v17 = vadd.f32 %v241_v16, %v239_v14  ;;  %p539_p9 = por %p538_p10, %p537_p7 }
  0x5f   : > { %v243_v18 = vadd.f32 %v242_v17, %v240_v15  ;;  %p540_p11 = pnand %p539_p9, %p533_p13 }
  0x61   : > { %468 = vrsqrt.f32 %v243_v18  ;;  %vm247_vm0 = vcmp.eq.f32.partialorder %v243_v18, inf  ;;  %v250_v20 = vand.u32 2147483648, %v243_v18  ;;  %vm249_vm1 = vcmp.eq.f32.partialorder %v243_v18, 0.0 }
  0x6b   : > { %v469_v19 = vpop.eup %468 }
  0x6c   : > { %v246_v21 = vmul.f32 %v469_v19, %v243_v18 }
  0x6e   : > { %v248_v22 = vsel %vm247_vm0, %v243_v18, %v246_v21 }
  0x6f   : > { %v251_v23 = vsel %vm249_vm1, %v250_v20, %v248_v22 }
  0x70   : > { %259 = vst [vmem:[%s219_s8] sm:$0xff] %v251_v23 }
  0x71   : > { %543 = shalt.err (!%p540_p11)
}
  0x72   : > { %s544_s27 = scalar_lea.hbm %s826_s3, 128  ;;  %s548_s29 = scalar_lea.hbm %s875_s2, 256 }
  0x73   : > { %p545_p1 = scmp.ne.s32.totalorder %s826_s3, %s544_s27  ;;  %p549_p5 = scmp.lt.u32.totalorder %s826_s3, %s875_s2 }
  0x74   : > { %p550_p4 = scmp.lt.u32.totalorder %s548_s29, %s544_s27  ;;  %p552_p0 = scmp.lt.u32.totalorder %s544_s27, %s826_s3 }
  0x75   : > { %p546_p6 = pnand %p545_p1, %p886_p3 }
  0x76   : > { %p551_p8 = por %p550_p4, %p549_p5 }
  0x77   : > { %p547_p2 = pneg %p546_p6 }
  0x78   : > { %p553_p12 = por %p552_p0, %p551_p8 }
  0x7a   : > { %p554_p13 = pnand %p553_p12, %p547_p2 }
  0x7c   : > { %557 = shalt.err (!%p554_p13)
}
  0x7d   : > { %403 = dma.vmem_to_hbm [thread:$0]  (%p886_p3), %s821_s18, 128, %s826_s3, %s261_s15  }
  0x7e PF: > { %s286_s7 = sand.u32 1, %s596_s9   ;;  %p887_p7 = scmp.ne.s32.totalorder %s881_s24, 0 }
  0x7f   : > { %p888_p10 = scmp.ge.s32.totalorder %s616_s14, 2  ;;  %s287_s21 = scalar_lea.sflag [#allocation5], %s286_s7 }
  0x81   : > { %p413_p9 = pnand %p888_p10, %p887_p7 }
  0x83   : > { %591 = dma.done.wait (!%p413_p9), %s287_s21, 128  }
  0x84   : > { %593 = vsyncadd (!%p413_p9), %s287_s21, 4294967168  ;;  %s21_s14 = sadd.s32 1, %s616_s14   ;;  %s889_s9 = smov %s600_s10 }
  0x85   : > { %p18_p11 = scmp.ge.s32.totalorder %s21_s14, 4   ;;  %s890_s10 = smov %s604_s11 }
  0x86   : > { %s891_s11 = smov %s694_s23  ;;  %s892_s12 = smov %s612_s13 }
  0x87   : > { %s893_s13 = smov %s895_s17  ;;  %20 = sbr.rel (!%p18_p11) target bundleno = 8 (0x8), region = 94 }
  0x8e   :  { %292 = vsyncpa [#allocation4], 1 }
  0x8f   :  { %294 = vsyncpa [#allocation4 + $0x1], 1 }
  0x90   :  { %295 = vsyncpa [#allocation7], 1 }
  0x91   :  { %297 = vsyncpa [#allocation7 + $0x1], 1 }
  0x92   :  { %298 = vsyncpa [#allocation5], 1 }
  0x93   :  { %300 = vsyncpa [#allocation5 + $0x1], 1 }

</bundles_post_ra>
